<compile_context>
chip_gen: v6e
topology: v6e:2x2x1
jax: 0.10.0
libtpu: 0.0.40
codegen_flags: <defaults>
</compile_context>

<pallas_src>
import functools

import jax
import jax.numpy as jnp
from jax import lax
from jax.experimental import pallas as pl
from jax.experimental.pallas import tpu as pltpu

LAMBDA_CLASS = 1.0
LAMBDA_NOOBJ = 10.0
LAMBDA_OBJ = 1.0
LAMBDA_BOX = 10.0

MAX_TILE_COLS = 16 * 1024              # lane-tile cap (multiple of 128)
VMEM_INPUT_BUDGET = 8 * 1024 * 1024    # budget for double-buffered input blocks
VMEM_LIMIT_BYTES = 32 * 1024 * 1024    # scoped-VMEM limit, safe on v5e/v6e/v7x


def _round_up(x, m):
    return (x + m - 1) // m * m


def _yolo_loss_kernel(anc_ref, p_ref, t_ref, out_ref, acc_ref, *,
                      cells, num_classes):
    a = pl.program_id(0)                 # anchor index  (parallel axis)
    i = pl.program_id(1)                 # cell-tile index (reduction axis)
    tile = p_ref.shape[-1]

    @pl.when(i == 0)
    def _init():
        acc_ref[...] = jnp.zeros_like(acc_ref)

    p = p_ref[0].astype(jnp.float32)     # (5+C, tile)
    t = t_ref[0].astype(jnp.float32)     # (6,   tile)

    obj_logit = p[0:1, :]
    px, py, pw, ph = p[1:2, :], p[2:3, :], p[3:4, :], p[4:5, :]
    cls_logits = p[5:, :]                # (C, tile)

    t_obj = t[0:1, :]
    tx, ty, tw, th = t[1:2, :], t[2:3, :], t[3:4, :], t[4:5, :]
    t_cls = t[5:6, :]

    # Per-step anchor (aw, ah): select row `a` of the tiny resident (A, 2)
    # block with an iota/where select (no per-cell anchor array anywhere).
    anc = anc_ref[...].astype(jnp.float32)                       # (A, 2)
    sel = lax.broadcasted_iota(jnp.int32, anc.shape, 0) == a
    anc_row = jnp.sum(jnp.where(sel, anc, 0.0), axis=0, keepdims=True)  # (1, 2)
    aw = anc_row[:, 0:1]                                         # (1, 1)
    ah = anc_row[:, 1:2]                                         # (1, 1)
    inv_aw = 1.0 / aw
    inv_ah = 1.0 / ah

    # Masks: ragged tail (partial last block) handled by `valid`; the
    # "-1 = ignore" cells are excluded by both masks.
    col = i * tile + lax.broadcasted_iota(jnp.int32, (1, tile), 1)
    valid = col < cells
    obj_m = jnp.logical_and(t_obj == 1.0, valid)
    noobj_m = jnp.logical_and(t_obj == 0.0, valid)

    # --- no-object loss: BCE-with-logits against target 0 (softplus) --------
    x = obj_logit
    bce = jnp.maximum(x, 0.0) + jnp.log(1.0 + jnp.exp(-jnp.abs(x)))

    # --- box decode + midpoint IoU -------------------------------------------
    sig_x = jax.nn.sigmoid(px)
    sig_y = jax.nn.sigmoid(py)
    bw = jnp.exp(pw) * aw
    bh = jnp.exp(ph) * ah

    b1x1, b1x2 = sig_x - bw * 0.5, sig_x + bw * 0.5
    b1y1, b1y2 = sig_y - bh * 0.5, sig_y + bh * 0.5
    b2x1, b2x2 = tx - tw * 0.5, tx + tw * 0.5
    b2y1, b2y2 = ty - th * 0.5, ty + th * 0.5
    inter = (jnp.maximum(jnp.minimum(b1x2, b2x2) - jnp.maximum(b1x1, b2x1), 0.0)
             * jnp.maximum(jnp.minimum(b1y2, b2y2) - jnp.maximum(b1y1, b2y1), 0.0))
    area1 = jnp.abs((b1x2 - b1x1) * (b1y2 - b1y1))
    area2 = jnp.abs((b2x2 - b2x1) * (b2y2 - b2y1))
    iou = inter / (area1 + area2 - inter + 1e-6)   # exact divide (tolerance)

    # --- objectness MSE -------------------------------------------------------
    sig_obj = jax.nn.sigmoid(x)
    obj_se = (sig_obj - iou * t_obj) ** 2

    # --- box regression MSE (pred xy sigmoided; target wh in log-space) ------
    twl = jnp.log(1e-16 + tw * inv_aw)
    thl = jnp.log(1e-16 + th * inv_ah)
    box_se = ((sig_x - tx) ** 2 + (sig_y - ty) ** 2
              + (pw - twl) ** 2 + (ph - thl) ** 2)

    # --- class cross-entropy --------------------------------------------------
    # TODO(synk): bf16 exp/logsumexp here for large num_classes on v6e/v7x.
    m = jnp.max(cls_logits, axis=0, keepdims=True)
    lse = m + jnp.log(jnp.sum(jnp.exp(cls_logits - m), axis=0, keepdims=True))
    cls_iota = lax.broadcasted_iota(jnp.int32, (num_classes, tile), 0)
    onehot = cls_iota == t_cls.astype(jnp.int32)
    picked = jnp.sum(jnp.where(onehot, cls_logits, 0.0), axis=0, keepdims=True)
    ce = lse - picked

    # --- masked per-lane partial sums: 4 live rows, direct row adds ----------
    obj_term = (LAMBDA_OBJ * obj_se + (LAMBDA_BOX * 0.25) * box_se
                + LAMBDA_CLASS * ce)
    acc_ref[0:1, :] += jnp.where(obj_m, obj_term, 0.0)   # weighted obj-side sum
    acc_ref[1:2, :] += jnp.where(noobj_m, bce, 0.0)      # noobj BCE sum
    acc_ref[2:3, :] += noobj_m.astype(jnp.float32)       # noobj count
    acc_ref[3:4, :] += obj_m.astype(jnp.float32)         # obj count

    @pl.when(i == pl.num_programs(1) - 1)
    def _finalize():
        sums = jnp.sum(acc_ref[...], axis=1, keepdims=True)   # (4, 1)
        out_ref[0] = jnp.broadcast_to(sums, (4, 128))          # lane-dense store


def yolo_loss(predictions, target, anchors, *,
              max_tile_cols=MAX_TILE_COLS,
              vmem_input_budget=VMEM_INPUT_BUDGET):
    assert predictions.ndim == 5 and target.ndim == 5
    assert predictions.shape[:-1] == target.shape[:-1]
    assert target.shape[-1] == 6
    N, A, S1, S2, D = predictions.shape
    assert anchors.shape == (A, 2)
    C = D - 5
    assert C >= 1
    Ma = N * S1 * S2                      # grid cells per anchor

    # Channel-major, anchor-outermost, lane-dense over grid cells.
    # One XLA transpose-copy per tensor; the trailing reshape is free.
    p_t = jnp.transpose(predictions, (1, 4, 0, 2, 3)).reshape(A, D, Ma)
    t_t = jnp.transpose(target, (1, 4, 0, 2, 3)).reshape(A, 6, Ma)
    anc = anchors.astype(jnp.float32)

    # Largest lane tile keeping double-buffered input blocks within budget.
    per_lane_bytes = 2 * (D + 6) * 4
    budget_tile = max(128, (vmem_input_budget // per_lane_bytes) // 128 * 128)
    tile = max(128, min(max_tile_cols, budget_tile, _round_up(Ma, 128)))
    grid = (A, pl.cdiv(Ma, tile))         # (parallel anchor axis, reduction)

    out = pl.pallas_call(
        functools.partial(_yolo_loss_kernel, cells=Ma, num_classes=C),
        out_shape=jax.ShapeDtypeStruct((A, 4, 128), jnp.float32),
        grid=grid,
        in_specs=[
            pl.BlockSpec((A, 2), lambda a, i: (0, 0)),        # anchors, resident
            pl.BlockSpec((1, D, tile), lambda a, i: (a, 0, i)),
            pl.BlockSpec((1, 6, tile), lambda a, i: (a, 0, i)),
        ],
        out_specs=pl.BlockSpec((1, 4, 128), lambda a, i: (a, 0, 0)),
        scratch_shapes=[pltpu.VMEM((4, tile), jnp.float32)],
        compiler_params=pltpu.CompilerParams(
            dimension_semantics=("parallel", "arbitrary"),
            vmem_limit_bytes=VMEM_LIMIT_BYTES),
    )(anc, p_t, t_t)

    # Combine per-anchor partial sums / counts into the four mean losses.
    partials = jnp.sum(out[:, :, 0], axis=0)                  # (4,)
    obj_side, bce_sum, n_noobj, n_obj = (partials[0], partials[1],
                                         partials[2], partials[3])
    # NOTE: like the PyTorch reference, n_obj == 0 or n_noobj == 0 -> NaN.
    # Counts are f32 (exact up to 2^24 cells).
    return obj_side / n_obj + LAMBDA_NOOBJ * bce_sum / n_noobj


def _yolo_loss_ref(predictions, target, anchors):
    p = predictions.astype(jnp.float32)
    t = target.astype(jnp.float32)
    anc = anchors.astype(jnp.float32).reshape(1, anchors.shape[0], 1, 1, 2)

    obj_f = (t[..., 0] == 1.0).astype(jnp.float32)
    noobj_f = (t[..., 0] == 0.0).astype(jnp.float32)

    def sig(v):
        return 1.0 / (1.0 + jnp.exp(-v))

    x = p[..., 0]
    bce = jnp.maximum(x, 0.0) - x * t[..., 0] + jnp.log(1.0 + jnp.exp(-jnp.abs(x)))
    no_object_loss = jnp.sum(bce * noobj_f) / jnp.sum(noobj_f)

    bx, by = sig(p[..., 1]), sig(p[..., 2])
    bw = jnp.exp(p[..., 3]) * anc[..., 0]
    bh = jnp.exp(p[..., 4]) * anc[..., 1]
    tx, ty, tw, th = t[..., 1], t[..., 2], t[..., 3], t[..., 4]

    b1x1, b1x2 = bx - bw / 2, bx + bw / 2
    b1y1, b1y2 = by - bh / 2, by + bh / 2
    b2x1, b2x2 = tx - tw / 2, tx + tw / 2
    b2y1, b2y2 = ty - th / 2, ty + th / 2
    inter = (jnp.maximum(jnp.minimum(b1x2, b2x2) - jnp.maximum(b1x1, b2x1), 0.0)
             * jnp.maximum(jnp.minimum(b1y2, b2y2) - jnp.maximum(b1y1, b2y1), 0.0))
    a1 = jnp.abs((b1x2 - b1x1) * (b1y2 - b1y1))
    a2 = jnp.abs((b2x2 - b2x1) * (b2y2 - b2y1))
    iou = inter / (a1 + a2 - inter + 1e-6)

    n_obj = jnp.sum(obj_f)
    object_loss = jnp.sum(((sig(x) - iou * t[..., 0]) ** 2) * obj_f) / n_obj

    twl = jnp.log(1e-16 + tw / anc[..., 0])
    thl = jnp.log(1e-16 + th / anc[..., 1])
    box_se = ((bx - tx) ** 2 + (by - ty) ** 2
              + (p[..., 3] - twl) ** 2 + (p[..., 4] - thl) ** 2)
    box_loss = jnp.sum(box_se * obj_f) / (4.0 * n_obj)

    logits = p[..., 5:]
    m = jnp.max(logits, axis=-1, keepdims=True)
    lse = m[..., 0] + jnp.log(jnp.sum(jnp.exp(logits - m), axis=-1))
    lbl = t[..., 5].astype(jnp.int32)
    picked = jnp.take_along_axis(logits, lbl[..., None], axis=-1)[..., 0]
    ce = lse - picked
    class_loss = jnp.sum(ce * obj_f) / n_obj

    return (LAMBDA_BOX * box_loss + LAMBDA_OBJ * object_loss
            + LAMBDA_NOOBJ * no_object_loss + LAMBDA_CLASS * class_loss)


if __name__ == "__main__":
    key = jax.random.PRNGKey(0)

    def make_inputs(k, N, A, S, C):
        kp, ko, kb, kw, kc, ka = jax.random.split(k, 6)
        preds = jax.random.normal(kp, (N, A, S, S, 5 + C), jnp.float32)
        u = jax.random.uniform(ko, (N, A, S, S))
        t_obj = jnp.where(u < 0.2, 1.0, jnp.where(u < 0.9, 0.0, -1.0))
        t_xy = jax.random.uniform(kb, (N, A, S, S, 2), minval=0.0, maxval=1.0)
        t_wh = jax.random.uniform(kw, (N, A, S, S, 2), minval=0.05, maxval=2.0)
        t_cls = jax.random.randint(kc, (N, A, S, S), 0, C).astype(jnp.float32)
        tgt = jnp.concatenate(
            [t_obj[..., None], t_xy, t_wh, t_cls[..., None]], axis=-1)
        anchs = jax.random.uniform(ka, (A, 2), minval=0.1, maxval=1.0)
        return preds, tgt, anchs

    # 1) Single-tile-per-anchor path (cells/anchor = 2*8*8 = 128).
    p1, t1, a1 = make_inputs(jax.random.fold_in(key, 1), 2, 3, 8, 4)
    out1 = jax.block_until_ready(yolo_loss(p1, t1, a1))
    ref1 = jax.block_until_ready(_yolo_loss_ref(p1, t1, a1))
    assert jnp.isfinite(out1), out1
    assert jnp.allclose(out1, ref1, rtol=1e-4, atol=1e-4), (out1, ref1)

    # 2) Multi-tile + ragged-tail path (cells/anchor = 2*13*13 = 338, tile=128).
    p2, t2, a2 = make_inputs(jax.random.fold_in(key, 2), 2, 3, 13, 6)
    out2 = jax.block_until_ready(yolo_loss(p2, t2, a2, max_tile_cols=128))
    ref2 = jax.block_until_ready(_yolo_loss_ref(p2, t2, a2))
    assert jnp.isfinite(out2), out2
    assert jnp.allclose(out2, ref2, rtol=1e-4, atol=1e-4), (out2, ref2)

    print("KERNEL_OK")
</pallas_src>

<mosaic_0001>
module attributes {stable_mosaic.version = 11 : i64} {
  func.func @_yolo_loss_kernel(%arg0: i32, %arg1: i32, %arg2: memref<3x2xf32, #tpu.memory_space<vmem>>, %arg3: memref<1x9x128xf32, #tpu.memory_space<vmem>>, %arg4: memref<1x6x128xf32, #tpu.memory_space<vmem>>, %arg5: memref<1x4x128xf32, #tpu.memory_space<vmem>>, %arg6: memref<4x128xf32, #tpu.memory_space<vmem>>) attributes {dimension_semantics = [#tpu.dimension_semantics<parallel>, #tpu.dimension_semantics<arbitrary>], iteration_bounds = array<i64: 3, 1>, scalar_prefetch = 0 : i64, scratch_operands = 1 : i64, tpu.core_type = #tpu.core_type<tc>, window_params = [{pipeline_mode = #tpu.pipeline_mode<synchronous>, transform_indices = @transform_0, window_bounds = array<i64: 3, 2>}, {transform_indices = @transform_1, window_bounds = array<i64: 1, 9, 128>}, {transform_indices = @transform_2, window_bounds = array<i64: 1, 6, 128>}, {transform_indices = @transform_3, window_bounds = array<i64: 1, 4, 128>}]} {
    %c0_i32 = arith.constant 0 : i32
    %0 = arith.cmpi eq, %arg1, %c0_i32 : i32
    %1 = arith.extui %0 : i1 to i32
    %c0_i32_0 = arith.constant 0 : i32
    %2 = arith.cmpi ne, %1, %c0_i32_0 : i32
    scf.if %2 {
      %cst_57 = arith.constant 0.000000e+00 : f32
      %197 = vector.broadcast %cst_57 : f32 to vector<4x128xf32>
      %c0_58 = arith.constant 0 : index
      %c0_59 = arith.constant 0 : index
      %198 = vector.load %arg6[%c0_58, %c0_59] : memref<4x128xf32, #tpu.memory_space<vmem>>, vector<4x128xf32>
      tpu.vector_store %arg6[%c0_58, %c0_59], %197 {strides = array<i32>} : memref<4x128xf32, #tpu.memory_space<vmem>>, vector<4x128xf32>,
    } else {
    }
    %c0 = arith.constant 0 : index
    %c0_1 = arith.constant 0 : index
    %c0_2 = arith.constant 0 : index
    %3 = vector.load %arg3[%c0, %c0_1, %c0_2] : memref<1x9x128xf32, #tpu.memory_space<vmem>>, vector<1x9x128xf32>
    %4 = vector.shape_cast %3 : vector<1x9x128xf32> to vector<9x128xf32>
    %c0_3 = arith.constant 0 : index
    %c0_4 = arith.constant 0 : index
    %c0_5 = arith.constant 0 : index
    %5 = vector.load %arg4[%c0_3, %c0_4, %c0_5] : memref<1x6x128xf32, #tpu.memory_space<vmem>>, vector<1x6x128xf32>
    %6 = vector.shape_cast %5 : vector<1x6x128xf32> to vector<6x128xf32>
    %7 = vector.extract_strided_slice %4 {offsets = [0, 0], sizes = [1, 128], strides = [1, 1]} : vector<9x128xf32> to vector<1x128xf32>
    %8 = vector.extract_strided_slice %4 {offsets = [1, 0], sizes = [1, 128], strides = [1, 1]} : vector<9x128xf32> to vector<1x128xf32>
    %9 = vector.extract_strided_slice %4 {offsets = [2, 0], sizes = [1, 128], strides = [1, 1]} : vector<9x128xf32> to vector<1x128xf32>
    %10 = vector.extract_strided_slice %4 {offsets = [3, 0], sizes = [1, 128], strides = [1, 1]} : vector<9x128xf32> to vector<1x128xf32>
    %11 = vector.extract_strided_slice %4 {offsets = [4, 0], sizes = [1, 128], strides = [1, 1]} : vector<9x128xf32> to vector<1x128xf32>
    %12 = vector.extract_strided_slice %4 {offsets = [5, 0], sizes = [4, 128], strides = [1, 1]} : vector<9x128xf32> to vector<4x128xf32>
    %13 = vector.extract_strided_slice %6 {offsets = [0, 0], sizes = [1, 128], strides = [1, 1]} : vector<6x128xf32> to vector<1x128xf32>
    %14 = vector.extract_strided_slice %6 {offsets = [1, 0], sizes = [1, 128], strides = [1, 1]} : vector<6x128xf32> to vector<1x128xf32>
    %15 = vector.extract_strided_slice %6 {offsets = [2, 0], sizes = [1, 128], strides = [1, 1]} : vector<6x128xf32> to vector<1x128xf32>
    %16 = vector.extract_strided_slice %6 {offsets = [3, 0], sizes = [1, 128], strides = [1, 1]} : vector<6x128xf32> to vector<1x128xf32>
    %17 = vector.extract_strided_slice %6 {offsets = [4, 0], sizes = [1, 128], strides = [1, 1]} : vector<6x128xf32> to vector<1x128xf32>
    %18 = vector.extract_strided_slice %6 {offsets = [5, 0], sizes = [1, 128], strides = [1, 1]} : vector<6x128xf32> to vector<1x128xf32>
    %c0_6 = arith.constant 0 : index
    %c0_7 = arith.constant 0 : index
    %19 = vector.load %arg2[%c0_6, %c0_7] : memref<3x2xf32, #tpu.memory_space<vmem>>, vector<3x2xf32>
    %20 = tpu.iota {dimensions = array<i32: 0>} : vector<3x2xi32>
    %21 = vector.broadcast %arg0 : i32 to vector<3x2xi32>
    %22 = arith.cmpi eq, %20, %21 : vector<3x2xi32>
    %cst = arith.constant 0.000000e+00 : f32
    %23 = vector.broadcast %cst : f32 to vector<3x2xf32>
    %24 = arith.select %22, %19, %23 : vector<3x2xi1>, vector<3x2xf32>
    %cst_8 = arith.constant dense<0.000000e+00> : vector<2xf32>
    %25 = vector.multi_reduction <add>, %24, %cst_8 [0] : vector<3x2xf32> to vector<2xf32>
    %26 = vector.shape_cast %25 : vector<2xf32> to vector<1x2xf32>
    %27 = vector.extract_strided_slice %26 {offsets = [0, 0], sizes = [1, 1], strides = [1, 1]} : vector<1x2xf32> to vector<1x1xf32>
    %28 = vector.extract_strided_slice %26 {offsets = [0, 1], sizes = [1, 1], strides = [1, 1]} : vector<1x2xf32> to vector<1x1xf32>
    %cst_9 = arith.constant 1.000000e+00 : f32
    %29 = vector.broadcast %cst_9 : f32 to vector<1x1xf32>
    %30 = arith.divf %29, %27 : vector<1x1xf32>
    %cst_10 = arith.constant 1.000000e+00 : f32
    %31 = vector.broadcast %cst_10 : f32 to vector<1x1xf32>
    %32 = arith.divf %31, %28 : vector<1x1xf32>
    %c128_i32 = arith.constant 128 : i32
    %33 = arith.muli %arg1, %c128_i32 : i32
    %34 = tpu.iota {dimensions = array<i32: 1>} : vector<1x128xi32>
    %35 = vector.broadcast %33 : i32 to vector<1x128xi32>
    %36 = arith.addi %35, %34 : vector<1x128xi32>
    %c128_i32_11 = arith.constant 128 : i32
    %37 = vector.broadcast %c128_i32_11 : i32 to vector<1x128xi32>
    %38 = arith.cmpi slt, %36, %37 : vector<1x128xi32>
    %cst_12 = arith.constant 1.000000e+00 : f32
    %39 = vector.broadcast %cst_12 : f32 to vector<1x128xf32>
    %40 = arith.cmpf oeq, %13, %39 : vector<1x128xf32>
    %41 = arith.andi %40, %38 : vector<1x128xi1>
    %cst_13 = arith.constant 0.000000e+00 : f32
    %42 = vector.broadcast %cst_13 : f32 to vector<1x128xf32>
    %43 = arith.cmpf oeq, %13, %42 : vector<1x128xf32>
    %44 = arith.andi %43, %38 : vector<1x128xi1>
    %cst_14 = arith.constant 0.000000e+00 : f32
    %45 = vector.broadcast %cst_14 : f32 to vector<1x128xf32>
    %46 = arith.maximumf %7, %45 : vector<1x128xf32>
    %47 = math.absf %7 : vector<1x128xf32>
    %cst_15 = arith.constant 0.000000e+00 : f32
    %48 = vector.broadcast %cst_15 : f32 to vector<1x128xf32>
    %49 = arith.subf %48, %47 : vector<1x128xf32>
    %50 = math.exp %49 : vector<1x128xf32>
    %cst_16 = arith.constant 1.000000e+00 : f32
    %51 = vector.broadcast %cst_16 : f32 to vector<1x128xf32>
    %52 = arith.addf %51, %50 : vector<1x128xf32>
    %53 = math.log %52 : vector<1x128xf32>
    %54 = arith.addf %46, %53 : vector<1x128xf32>
    %55 = arith.negf %8 : vector<1x128xf32>
    %56 = math.exp %55 : vector<1x128xf32>
    %cst_17 = arith.constant 1.000000e+00 : f32
    %57 = vector.broadcast %cst_17 : f32 to vector<1x128xf32>
    %58 = arith.addf %57, %56 : vector<1x128xf32>
    %59 = arith.divf %57, %58 : vector<1x128xf32>
    %60 = arith.negf %9 : vector<1x128xf32>
    %61 = math.exp %60 : vector<1x128xf32>
    %cst_18 = arith.constant 1.000000e+00 : f32
    %62 = vector.broadcast %cst_18 : f32 to vector<1x128xf32>
    %63 = arith.addf %62, %61 : vector<1x128xf32>
    %64 = arith.divf %62, %63 : vector<1x128xf32>
    %65 = math.exp %10 : vector<1x128xf32>
    %66 = vector.broadcast %27 : vector<1x1xf32> to vector<1x128xf32>
    %67 = arith.mulf %65, %66 : vector<1x128xf32>
    %68 = math.exp %11 : vector<1x128xf32>
    %69 = vector.broadcast %28 : vector<1x1xf32> to vector<1x128xf32>
    %70 = arith.mulf %68, %69 : vector<1x128xf32>
    %cst_19 = arith.constant 5.000000e-01 : f32
    %71 = vector.broadcast %cst_19 : f32 to vector<1x128xf32>
    %72 = arith.mulf %67, %71 : vector<1x128xf32>
    %73 = arith.subf %59, %72 : vector<1x128xf32>
    %cst_20 = arith.constant 5.000000e-01 : f32
    %74 = vector.broadcast %cst_20 : f32 to vector<1x128xf32>
    %75 = arith.mulf %67, %74 : vector<1x128xf32>
    %76 = arith.addf %59, %75 : vector<1x128xf32>
    %cst_21 = arith.constant 5.000000e-01 : f32
    %77 = vector.broadcast %cst_21 : f32 to vector<1x128xf32>
    %78 = arith.mulf %70, %77 : vector<1x128xf32>
    %79 = arith.subf %64, %78 : vector<1x128xf32>
    %cst_22 = arith.constant 5.000000e-01 : f32
    %80 = vector.broadcast %cst_22 : f32 to vector<1x128xf32>
    %81 = arith.mulf %70, %80 : vector<1x128xf32>
    %82 = arith.addf %64, %81 : vector<1x128xf32>
    %cst_23 = arith.constant 5.000000e-01 : f32
    %83 = vector.broadcast %cst_23 : f32 to vector<1x128xf32>
    %84 = arith.mulf %16, %83 : vector<1x128xf32>
    %85 = arith.subf %14, %84 : vector<1x128xf32>
    %cst_24 = arith.constant 5.000000e-01 : f32
    %86 = vector.broadcast %cst_24 : f32 to vector<1x128xf32>
    %87 = arith.mulf %16, %86 : vector<1x128xf32>
    %88 = arith.addf %14, %87 : vector<1x128xf32>
    %cst_25 = arith.constant 5.000000e-01 : f32
    %89 = vector.broadcast %cst_25 : f32 to vector<1x128xf32>
    %90 = arith.mulf %17, %89 : vector<1x128xf32>
    %91 = arith.subf %15, %90 : vector<1x128xf32>
    %cst_26 = arith.constant 5.000000e-01 : f32
    %92 = vector.broadcast %cst_26 : f32 to vector<1x128xf32>
    %93 = arith.mulf %17, %92 : vector<1x128xf32>
    %94 = arith.addf %15, %93 : vector<1x128xf32>
    %95 = arith.minimumf %76, %88 : vector<1x128xf32>
    %96 = arith.maximumf %73, %85 : vector<1x128xf32>
    %97 = arith.subf %95, %96 : vector<1x128xf32>
    %cst_27 = arith.constant 0.000000e+00 : f32
    %98 = vector.broadcast %cst_27 : f32 to vector<1x128xf32>
    %99 = arith.maximumf %97, %98 : vector<1x128xf32>
    %100 = arith.minimumf %82, %94 : vector<1x128xf32>
    %101 = arith.maximumf %79, %91 : vector<1x128xf32>
    %102 = arith.subf %100, %101 : vector<1x128xf32>
    %cst_28 = arith.constant 0.000000e+00 : f32
    %103 = vector.broadcast %cst_28 : f32 to vector<1x128xf32>
    %104 = arith.maximumf %102, %103 : vector<1x128xf32>
    %105 = arith.mulf %99, %104 : vector<1x128xf32>
    %106 = arith.subf %76, %73 : vector<1x128xf32>
    %107 = arith.subf %82, %79 : vector<1x128xf32>
    %108 = arith.mulf %106, %107 : vector<1x128xf32>
    %109 = math.absf %108 : vector<1x128xf32>
    %110 = arith.subf %88, %85 : vector<1x128xf32>
    %111 = arith.subf %94, %91 : vector<1x128xf32>
    %112 = arith.mulf %110, %111 : vector<1x128xf32>
    %113 = math.absf %112 : vector<1x128xf32>
    %114 = arith.addf %109, %113 : vector<1x128xf32>
    %115 = arith.subf %114, %105 : vector<1x128xf32>
    %cst_29 = arith.constant 9.99999997E-7 : f32
    %116 = vector.broadcast %cst_29 : f32 to vector<1x128xf32>
    %117 = arith.addf %115, %116 : vector<1x128xf32>
    %118 = arith.divf %105, %117 : vector<1x128xf32>
    %119 = arith.negf %7 : vector<1x128xf32>
    %120 = math.exp %119 : vector<1x128xf32>
    %cst_30 = arith.constant 1.000000e+00 : f32
    %121 = vector.broadcast %cst_30 : f32 to vector<1x128xf32>
    %122 = arith.addf %121, %120 : vector<1x128xf32>
    %123 = arith.divf %121, %122 : vector<1x128xf32>
    %124 = arith.mulf %118, %13 : vector<1x128xf32>
    %125 = arith.subf %123, %124 : vector<1x128xf32>
    %126 = arith.mulf %125, %125 : vector<1x128xf32>
    %127 = vector.broadcast %30 : vector<1x1xf32> to vector<1x128xf32>
    %128 = arith.mulf %16, %127 : vector<1x128xf32>
    %cst_31 = arith.constant 1.000000e-16 : f32
    %129 = vector.broadcast %cst_31 : f32 to vector<1x128xf32>
    %130 = arith.addf %129, %128 : vector<1x128xf32>
    %131 = math.log %130 : vector<1x128xf32>
    %132 = vector.broadcast %32 : vector<1x1xf32> to vector<1x128xf32>
    %133 = arith.mulf %17, %132 : vector<1x128xf32>
    %cst_32 = arith.constant 1.000000e-16 : f32
    %134 = vector.broadcast %cst_32 : f32 to vector<1x128xf32>
    %135 = arith.addf %134, %133 : vector<1x128xf32>
    %136 = math.log %135 : vector<1x128xf32>
    %137 = arith.subf %59, %14 : vector<1x128xf32>
    %138 = arith.mulf %137, %137 : vector<1x128xf32>
    %139 = arith.subf %64, %15 : vector<1x128xf32>
    %140 = arith.mulf %139, %139 : vector<1x128xf32>
    %141 = arith.addf %138, %140 : vector<1x128xf32>
    %142 = arith.subf %10, %131 : vector<1x128xf32>
    %143 = arith.mulf %142, %142 : vector<1x128xf32>
    %144 = arith.addf %141, %143 : vector<1x128xf32>
    %145 = arith.subf %11, %136 : vector<1x128xf32>
    %146 = arith.mulf %145, %145 : vector<1x128xf32>
    %147 = arith.addf %144, %146 : vector<1x128xf32>
    %cst_33 = arith.constant dense<0xFF800000> : vector<128xf32>
    %148 = vector.multi_reduction <maximumf>, %12, %cst_33 [0] : vector<4x128xf32> to vector<128xf32>
    %149 = vector.shape_cast %148 : vector<128xf32> to vector<1x128xf32>
    %150 = vector.broadcast %149 : vector<1x128xf32> to vector<4x128xf32>
    %151 = arith.subf %12, %150 : vector<4x128xf32>
    %152 = math.exp %151 : vector<4x128xf32>
    %cst_34 = arith.constant dense<0.000000e+00> : vector<128xf32>
    %153 = vector.multi_reduction <add>, %152, %cst_34 [0] : vector<4x128xf32> to vector<128xf32>
    %154 = vector.shape_cast %153 : vector<128xf32> to vector<1x128xf32>
    %155 = math.log %154 : vector<1x128xf32>
    %156 = arith.addf %149, %155 : vector<1x128xf32>
    %157 = tpu.iota {dimensions = array<i32: 0>} : vector<4x128xi32>
    %158 = arith.fptosi %18 : vector<1x128xf32> to vector<1x128xi32>
    %159 = vector.broadcast %158 : vector<1x128xi32> to vector<4x128xi32>
    %160 = arith.cmpi eq, %157, %159 : vector<4x128xi32>
    %cst_35 = arith.constant 0.000000e+00 : f32
    %161 = vector.broadcast %cst_35 : f32 to vector<4x128xf32>
    %162 = arith.select %160, %12, %161 : vector<4x128xi1>, vector<4x128xf32>
    %cst_36 = arith.constant dense<0.000000e+00> : vector<128xf32>
    %163 = vector.multi_reduction <add>, %162, %cst_36 [0] : vector<4x128xf32> to vector<128xf32>
    %164 = vector.shape_cast %163 : vector<128xf32> to vector<1x128xf32>
    %165 = arith.subf %156, %164 : vector<1x128xf32>
    %cst_37 = arith.constant 1.000000e+00 : f32
    %166 = vector.broadcast %cst_37 : f32 to vector<1x128xf32>
    %167 = arith.mulf %166, %126 : vector<1x128xf32>
    %cst_38 = arith.constant 2.500000e+00 : f32
    %168 = vector.broadcast %cst_38 : f32 to vector<1x128xf32>
    %169 = arith.mulf %168, %147 : vector<1x128xf32>
    %170 = arith.addf %167, %169 : vector<1x128xf32>
    %cst_39 = arith.constant 1.000000e+00 : f32
    %171 = vector.broadcast %cst_39 : f32 to vector<1x128xf32>
    %172 = arith.mulf %171, %165 : vector<1x128xf32>
    %173 = arith.addf %170, %172 : vector<1x128xf32>
    %c0_40 = arith.constant 0 : index
    %c0_41 = arith.constant 0 : index
    %174 = vector.load %arg6[%c0_40, %c0_41] : memref<4x128xf32, #tpu.memory_space<vmem>>, vector<1x128xf32>
    %cst_42 = arith.constant 0.000000e+00 : f32
    %175 = vector.broadcast %cst_42 : f32 to vector<1x128xf32>
    %176 = arith.select %41, %173, %175 : vector<1x128xi1>, vector<1x128xf32>
    %177 = arith.addf %174, %176 : vector<1x128xf32>
    %c0_43 = arith.constant 0 : index
    %c0_44 = arith.constant 0 : index
    %178 = vector.load %arg6[%c0_43, %c0_44] : memref<4x128xf32, #tpu.memory_space<vmem>>, vector<1x128xf32>
    tpu.vector_store %arg6[%c0_43, %c0_44], %177 {strides = array<i32>} : memref<4x128xf32, #tpu.memory_space<vmem>>, vector<1x128xf32>,
    %c1 = arith.constant 1 : index
    %c0_45 = arith.constant 0 : index
    %179 = vector.load %arg6[%c1, %c0_45] : memref<4x128xf32, #tpu.memory_space<vmem>>, vector<1x128xf32>
    %cst_46 = arith.constant 0.000000e+00 : f32
    %180 = vector.broadcast %cst_46 : f32 to vector<1x128xf32>
    %181 = arith.select %44, %54, %180 : vector<1x128xi1>, vector<1x128xf32>
    %182 = arith.addf %179, %181 : vector<1x128xf32>
    %c1_47 = arith.constant 1 : index
    %c0_48 = arith.constant 0 : index
    %183 = vector.load %arg6[%c1_47, %c0_48] : memref<4x128xf32, #tpu.memory_space<vmem>>, vector<1x128xf32>
    tpu.vector_store %arg6[%c1_47, %c0_48], %182 {strides = array<i32>} : memref<4x128xf32, #tpu.memory_space<vmem>>, vector<1x128xf32>,
    %c2 = arith.constant 2 : index
    %c0_49 = arith.constant 0 : index
    %184 = vector.load %arg6[%c2, %c0_49] : memref<4x128xf32, #tpu.memory_space<vmem>>, vector<1x128xf32>
    %185 = arith.extui %44 : vector<1x128xi1> to vector<1x128xi32>
    %186 = arith.sitofp %185 : vector<1x128xi32> to vector<1x128xf32>
    %187 = arith.addf %184, %186 : vector<1x128xf32>
    %c2_50 = arith.constant 2 : index
    %c0_51 = arith.constant 0 : index
    %188 = vector.load %arg6[%c2_50, %c0_51] : memref<4x128xf32, #tpu.memory_space<vmem>>, vector<1x128xf32>
    tpu.vector_store %arg6[%c2_50, %c0_51], %187 {strides = array<i32>} : memref<4x128xf32, #tpu.memory_space<vmem>>, vector<1x128xf32>,
    %c3 = arith.constant 3 : index
    %c0_52 = arith.constant 0 : index
    %189 = vector.load %arg6[%c3, %c0_52] : memref<4x128xf32, #tpu.memory_space<vmem>>, vector<1x128xf32>
    %190 = arith.extui %41 : vector<1x128xi1> to vector<1x128xi32>
    %191 = arith.sitofp %190 : vector<1x128xi32> to vector<1x128xf32>
    %192 = arith.addf %189, %191 : vector<1x128xf32>
    %c3_53 = arith.constant 3 : index
    %c0_54 = arith.constant 0 : index
    %193 = vector.load %arg6[%c3_53, %c0_54] : memref<4x128xf32, #tpu.memory_space<vmem>>, vector<1x128xf32>
    tpu.vector_store %arg6[%c3_53, %c0_54], %192 {strides = array<i32>} : memref<4x128xf32, #tpu.memory_space<vmem>>, vector<1x128xf32>,
    %c0_i32_55 = arith.constant 0 : i32
    %194 = arith.cmpi eq, %arg1, %c0_i32_55 : i32
    %195 = arith.extui %194 : i1 to i32
    %c0_i32_56 = arith.constant 0 : i32
    %196 = arith.cmpi ne, %195, %c0_i32_56 : i32
    scf.if %196 {
      %c0_57 = arith.constant 0 : index
      %c0_58 = arith.constant 0 : index
      %197 = vector.load %arg6[%c0_57, %c0_58] : memref<4x128xf32, #tpu.memory_space<vmem>>, vector<4x128xf32>
      %cst_59 = arith.constant dense<0.000000e+00> : vector<4xf32>
      %198 = vector.multi_reduction <add>, %197, %cst_59 [1] : vector<4x128xf32> to vector<4xf32>
      %199 = vector.shape_cast %198 : vector<4xf32> to vector<4x1xf32>
      %200 = vector.shape_cast %199 : vector<4x1xf32> to vector<4x1xf32>
      %201 = vector.broadcast %200 : vector<4x1xf32> to vector<4x128xf32>
      %c0_60 = arith.constant 0 : index
      %c0_61 = arith.constant 0 : index
      %c0_62 = arith.constant 0 : index
      %202 = vector.load %arg5[%c0_60, %c0_61, %c0_62] : memref<1x4x128xf32, #tpu.memory_space<vmem>>, vector<1x4x128xf32>
      %203 = vector.shape_cast %202 : vector<1x4x128xf32> to vector<4x128xf32>
      %204 = vector.shape_cast %201 : vector<4x128xf32> to vector<1x4x128xf32>
      tpu.vector_store %arg5[%c0_60, %c0_61, %c0_62], %204 {strides = array<i32>} : memref<1x4x128xf32, #tpu.memory_space<vmem>>, vector<1x4x128xf32>,
    } else {
    }
    return
  }
  func.func @transform_0(%arg0: i32, %arg1: i32) -> (i32, i32) {
    %c0_i32 = arith.constant 0 : i32
    %c0_i32_0 = arith.constant 0 : i32
    %c0_i32_1 = arith.constant 0 : i32
    return %c0_i32, %c0_i32_0 : i32, i32
  }
  func.func @transform_1(%arg0: i32, %arg1: i32) -> (i32, i32, i32) {
    %c0_i32 = arith.constant 0 : i32
    %c0_i32_0 = arith.constant 0 : i32
    return %arg0, %c0_i32, %arg1 : i32, i32, i32
  }
  func.func @transform_2(%arg0: i32, %arg1: i32) -> (i32, i32, i32) {
    %c0_i32 = arith.constant 0 : i32
    %c0_i32_0 = arith.constant 0 : i32
    return %arg0, %c0_i32, %arg1 : i32, i32, i32
  }
  func.func @transform_3(%arg0: i32, %arg1: i32) -> (i32, i32, i32) {
    %c0_i32 = arith.constant 0 : i32
    %c0_i32_0 = arith.constant 0 : i32
    %c0_i32_1 = arith.constant 0 : i32
    return %arg0, %c0_i32, %c0_i32_0 : i32, i32, i32
  }
}

</mosaic_0001>

<bundles_post_ra>
// kernel: tpu_custom_call.1
= control target key start
LH: loop header
LB: loop body
LE: loop exit
PB: predicated region body
PF: predicated region fallthrough
CT: control target
= control target key end

     0   :  { %8 = vsyncpa [#allocation4], 0  ;;  %s939_s0 = inlined_call_operand.vmem [shape: f32[3,2], index: 0, kind: input, shape index: {}]   ;;  %s940_s1 = inlined_call_operand.vmem [shape: f32[3,9,128], index: 1, kind: input, shape index: {}]   ;;  %s941_s2 = inlined_call_operand.vmem [shape: f32[3,6,128], index: 2, kind: input, shape index: {}]   ;;  %s942_s3 = inlined_call_operand.hbm [shape: f32[3,4,128], index: 3, kind: output, shape index: {}]  }
   0x1   :  { %10 = vsyncpa [#allocation4 + $0x1], 0  ;;  %s772_s12 = smov 0   ;;  %s774_s13 = smov 0  }
   0x2   :  { %s776_s14 = smov 0   ;;  %s778_s15 = smov 0  }
   0x3   :  { %s780_s16 = smov 0   ;;  %s782_s17 = smov 0  }
   0x4 LB: > { %s564_s18 = sadd.s32 4294967295, %s746_s17   ;;  %s565_s19 = sadd.s32 4294967294, %s746_s17   ;;  %s746_s17 = sphi %s782_s17, %s16_s17   ;;  %s742_s16 = sphi %s780_s16, %s949_s16   ;;  %s738_s15 = sphi %s778_s15, %s948_s15   ;;  %s734_s14 = sphi %s776_s14, %s947_s14   ;;  %s730_s13 = sphi %s774_s13, %s946_s13   ;;  %s726_s12 = sphi %s772_s12, %s945_s12  }
   0x5   : > { %s28_s20 = sadd.s32 1, %s742_s16  ;;  %s112_s21 = sadd.s32 1, %s734_s14 }
   0x6   : > { %p30_p0 = scmp.ge.s32.totalorder %s28_s20, 3  ;;  %p122_p1 = scmp.ne.s32.totalorder %s734_s14, %s730_s13 }
   0x7   : > { %p123_p2 = scmp.eq.s32.totalorder %s564_s18, 2  ;;  %p128_p3 = scmp.ne.s32.totalorder %s730_s13, %s726_s12 }
   0x8   : > { %s951_s20 = smov (%p30_p0, %s28_s20), 0  ;;  %p129_p5 = scmp.eq.s32.totalorder %s565_s19, 2 }
   0x9   : > { %p812_p4 = por %p123_p2, %p122_p1  ;;  %s109_s23 = ssub.s32 %s742_s16, %s951_s20 }
   0xa   : > { %p568_p6 = scmp.ge.s32.totalorder %s746_s17, 1  ;;  %p110_p7 = scmp.eq.s32.totalorder %s109_s23, 0 }
   0xb   : > { %p819_p8 = por %p129_p5, %p128_p3  ;;  %p171_p9 = scmp.lt.s32.totalorder %s746_s17, 4 }
   0xc   : > { %s825_s25 = scalar_select %p110_p7, %s734_s14, %s112_s21  }
   0xd   : > { %p172_p10 = pnand %p568_p6, %p171_p9 }
   0xe   : > { %p205_p11 = scmp.lt.s32.totalorder (!%p172_p10), %s738_s15, 2  ;;  %s202_s10 = sand.u32 (!%p172_p10), 1, %s730_s13  }
   0xf   : > { %175 = sbr.rel (%p172_p10) target bundleno = 381 (0x17d), region = 32  ;;  %s569_s11 = sshll.u32 (!%p172_p10), %s202_s10, 2 }
  0x10   : > { %s204_s18 = scalar_lea.vmem (!%p172_p10), [#allocation3], %s569_s11  ;;  %s577_s21 = sshll.u32 (!%p172_p10), %s738_s15, 6 }
  0x11   : > { %s476_s19 = sshll.u32 (!%p172_p10), %s204_s18, 4  ;;  %s474_s27 = scalar_lea.hbm (!%p172_p10), %s942_s3, %s577_s21  ;;  %s896_s19 = int_to_ptr.vmem [resolvable:$true] %s476_s19 }
  0x12   : > { %s751_s30 = smov (!%p172_p10), [#allocation3]  }
  0x13   : > { %s674_s4 = sshll.u32 (!%p172_p10), %s751_s30, 4  ;;  %s675_s4 = int_to_ptr.vmem [resolvable:$false] %s674_s4 }
  0x14   : > { %v229_v0 = vlaneseq  ;;  %v748_v1 = vmov 1   ;;  %v231_v2 = vstv %s738_s15  ;;  %v228_v3 = vld [vmem:[%s939_s0] sm:$0x7]  ;;  %v749_v5 = vmov 0   ;;  %s835_s28 = scalar_select %p205_p11, %s738_s15, 2 }
  0x15   : > { %641 = vset.pattern.permute.xlu0 %v748_v1  ;;  %643 = vset.pattern.permute.xlu1 %v749_v5  ;;  %vm234_vm0 = vcmask 10240   ;;  %vm374_vm2 = vcmask 1047557   ;;  %vm376_vm3 = vcmask 1040384   ;;  %vm393_vm4 = vcmask 1042432   ;;  %s676_s15 = scalar_lea.vmem %s675_s4, 128  ;;  %p677_p1 = scmp.lt.s32.totalorder %s896_s19, %s675_s4 }
  0x16   : > { %v832_v4 = vshrl.u32 %v229_v0, 7  ;;  %s580_s29 = sshll.u32 %s835_s28, 4  ;;  %s572_s6 = sshll.u32 %s835_s28, 3  ;;  %vm398_vm5 = vcmask 1043456   ;;  %v750_v60 = vmov 0.0  }
  0x17   : > { %s212_s5 = scalar_lea.vmem %s940_s1, %s580_s29  ;;  %s219_s9 = scalar_lea.vmem %s941_s2, %s572_s6  ;;  %224 = vst [vmem:[#allocation2] sm:$0xf] %v750_v60 }
  0x18   : > { %vm232_vm1 = vcmp.eq.s32.totalorder %v832_v4, %v231_v2  ;;  %v842_v8 = vld [vmem:[%s212_s5] sm:$0xff]  ;;  %v226_v9 = vld [vmem:[%s212_s5 + $0x8] sm:$0x1]  ;;  %v412_v43 = vsub.s32 5, %v832_v4  ;;  %s463_s28 = scalar_lea.sflag [#allocation4], %s202_s10  ;;  %s670_s29 = scalar_lea.vmem %s896_s19, 64 }
  0x19   : > { %v233_v6 = vsel %vm232_vm1, %v228_v3, 0.0  ;;  %v375_v11 = vsel %vm374_vm2, %v842_v8, -inf  ;;  %v377_v12 = vsel %vm376_vm3, %v226_v9, -inf  ;;  %v255_v29 = vand.u32 2147483647, %v842_v8  ;;  %p671_p12 = scmp.ne.s32.totalorder %s896_s19, %s670_s29  ;;  %p678_p2 = scmp.lt.s32.totalorder %s676_s15, %s670_s29 }
  0x1a   : > { %v235_v7 = vsel %vm234_vm0, %v233_v6, 0.0  ;;  %v378_v14 = vmax.f32 %v375_v11, %v377_v12  ;;  %v855_v37 = vld [vmem:[%s219_s9] sm:$0x3f]  ;;  %v417_v47 = vrot.slane %v842_v8, 5  ;;  %v418_v48 = vrot.slane %v226_v9, 5 }
  0x1b   : > { %v236_v10 = vrot.slane %v235_v7, 4  ;;  %v256_v31 = vsub.f32 0.0, %v255_v29  ;;  %v581_v40 = vtrunc.f32 %v855_v37  ;;  %v254_v63 = vmax.f32 %v842_v8, 0.0  ;;  %p672_p13 = pnand %p671_p12, %p812_p4  ;;  %p679_p3 = por %p678_p2, %p677_p1 }
  0x1c   : > { %v379_v16 = vrot.slane %v378_v14, 4  ;;  %v419_v51 = vsel %vm393_vm4, %v417_v47, %v418_v48  ;;  %vm252_vm7 = vcmp.eq.f32.partialorder %v855_v37, 0.0  ;;  %vm250_vm8 = vcmp.eq.f32.partialorder %v855_v37, 1.0 }
  0x1d   : > { %v237_v13 = vadd.f32 %v236_v10, %v235_v7  ;;  %v257_v32 = vmul.f32 1.442695, %v256_v31  ;;  %v582_v42 = vcvt.f32.s32 %v581_v40  ;;  %v575_v11 = vsel %vm250_vm8, 1.0, %v750_v60  ;;  %p673_p0 = pneg %p672_p13 }
  0x1e   : > { %v380_v18 = vmax.f32 %v378_v14, %v379_v16  ;;  %v440_v3 = vld [vmem:[#allocation2 + $0x1] sm:$0x1]  ;;  %v449_v10 = vld [vmem:[#allocation2 + $0x3] sm:$0x1] }
  0x1f   : > { %v238_v15 = vrot.slane %v237_v13, 2  ;;  %v413_v46 = vrot.slane %v582_v42, %v412_v43  ;;  %p680_p5 = pnand %p679_p3, %p673_p0 }
  0x20   : > { %v381_v20 = vrot.slane %v380_v18, 2 }
  0x21   : > { %v239_v17 = vadd.f32 %v238_v15, %v237_v13  ;;  %vm414_vm6 = vcmp.eq.s32.totalorder %v832_v4, %v413_v46  ;;  %v452_v15 = vadd.f32 %v575_v11, %v449_v10 }
  0x22   : > { %v382_v22 = vmax.f32 %v380_v18, %v381_v20  ;;  %v421_v53 = vsel %vm414_vm6, %v419_v51, 0.0  ;;  %v573_v18 = vmul.f32 -1.442695, %v842_v8 }
  0x23   : > { %v240_v19 = vrot.slane %v239_v17, 1  ;;  %v422_v54 = vsel %vm398_vm5, %v421_v53, 0.0  ;;  %453 = vst [vmem:[#allocation2 + $0x3] sm:$0x1] %v452_v15  ;;  %v331_v15 = vrot.slane %v855_v37, 7 }
  0x24   : > { %v383_v23 = vrot.slane %v382_v22, 1  ;;  %v423_v56 = vrot.slane %v422_v54, 4 }
  0x25   : > { %v241_v21 = vadd.f32 %v240_v19, %v239_v17  ;;  %v269_v19 = vmul.f32 1.442695, %v842_v8 }
  0x26   : > { %v845_v24 = vmax.f32 %v382_v22, %v383_v23  ;;  %v424_v58 = vadd.f32 %v423_v56, %v422_v54  ;;  %v294_v22 = vmul.f32 0.5, %v855_v37 }
  0x27   : > { %278 = vperm.xlu0 %641, %v241_v21   ;;  %646 = vrcp.f32 %v241_v21 }
  0x28   : > { %v385_v25 = vsub.f32 %v842_v8, %v845_v24  ;;  %v386_v26 = vsub.f32 %v226_v9, %v845_v24  ;;  %v425_v59 = vrot.slane %v424_v58, 2  ;;  %v444_v9 = vld [vmem:[#allocation2 + $0x2] sm:$0x1]  ;;  %v296_v23 = vrot.slane %v294_v22, 2 }
  0x2a   : > { %v387_v27 = vmul.f32 1.442695, %v385_v25  ;;  %v389_v28 = vmul.f32 1.442695, %v386_v26  ;;  %v426_v61 = vadd.f32 %v425_v59, %v424_v58  ;;  %v298_v26 = vsub.f32 %v855_v37, %v296_v23 }
  0x2b   : > { %642 = vset.pattern.permute.xlu0 %v749_v5  ;;  %v574_v5 = vsel %vm252_vm7, 1.0, %v750_v60 }
  0x2c   : > { %273 = vperm.xlu0 %642, %v241_v21   ;;  %648 = vpow2.f32 %v387_v27  ;;  %v427_v2 = vrot.slane %v426_v61, 1  ;;  %v447_v14 = vadd.f32 %v574_v5, %v444_v9  ;;  %v299_v27 = vadd.f32 %v296_v23, %v855_v37 }
  0x2d   : > { %650 = vpow2.f32 %v389_v28 }
  0x2e   : > { %652 = vpow2.f32 %v257_v32  ;;  %v870_v13 = vadd.f32 %v427_v2, %v426_v61  ;;  %448 = vst [vmem:[#allocation2 + $0x2] sm:$0x1] %v447_v14  ;;  %v319_v31 = vsub.f32 %v299_v27, %v298_v26 }
  0x30   : > { %645 = vset.pattern.permute.xlu0 %v748_v1 }
  0x34   : > { %v647_v30 = vpop.eup %646 }
  0x35   : > { %341 = vperm.xlu1 %643, %v647_v30  }
  0x39   : > { %644 = vset.pattern.permute.xlu1 %v748_v1  ;;  %v649_v33 = vpop.eup %648 }
  0x3a   : > { %349 = vperm.xlu1 %644, %v647_v30   ;;  %v651_v34 = vpop.eup %650  ;;  %v394_v35 = vrot.slane %v649_v33, 5 }
  0x3b   : > { %v395_v36 = vrot.slane %v651_v34, 5  ;;  %v653_v45 = vpop.eup %652 }
  0x3c   : > { %v259_v49 = vadd.f32 1.0, %v653_v45 }
  0x3d   : > { %v396_v38 = vsel %vm393_vm4, %v394_v35, %v395_v36 }
  0x3e   : > { %v399_v39 = vsel %vm398_vm5, %v396_v38, 0.0  ;;  %654 = vlog2.f32 %v259_v49 }
  0x3f   : > { %v400_v41 = vrot.slane %v399_v39, 4 }
  0x41   : > { %v401_v44 = vadd.f32 %v400_v41, %v399_v39  ;;  %v321_v39 = vrot.slane %v319_v31, 1 }
  0x43   : > { %v402_v50 = vrot.slane %v401_v44, 2  ;;  %v323_v48 = vmul.f32 %v321_v39, %v319_v31 }
  0x45   : > { %v403_v52 = vadd.f32 %v402_v50, %v401_v44  ;;  %v324_v58 = vand.u32 2147483647, %v323_v48 }
  0x47   : > { %v404_v55 = vrot.slane %v403_v52, 1 }
  0x49   : > { %v405_v57 = vadd.f32 %v404_v55, %v403_v52 }
  0x4b   : > { %656 = vlog2.f32 %v405_v57  ;;  %v655_v62 = vpop.eup %654 }
  0x4c   : > { %v261_v0 = vmul.f32 0.6931472, %v655_v62  ;;  %658 = vpow2.f32 %v573_v18 }
  0x4d   : > { %660 = vpow2.f32 %v269_v19 }
  0x4e   : > { %v262_v1 = vadd.f32 %v261_v0, %v254_v63 }
  0x50   : > { %v441_v4 = vsel %vm252_vm7, %v262_v1, 0.0 }
  0x51   : > { %v442_v7 = vadd.f32 %v441_v4, %v440_v3 }
  0x53   : > { %443 = vst [vmem:[#allocation2 + $0x1] sm:$0x1] %v442_v7 }
  0x58   : > { %v657_v6 = vpop.eup %656 }
  0x59   : > { %v407_v12 = vmul.f32 0.6931472, %v657_v6  ;;  %v659_v20 = vpop.eup %658 }
  0x5a   : > { %v266_v21 = vadd.f32 1.0, %v659_v20  ;;  %v661_v25 = vpop.eup %660 }
  0x5b   : > { %v873_v16 = vadd.f32 %v407_v12, %v845_v24 }
  0x5c   : > { %662 = vrcp.f32 %v266_v21 }
  0x5d   : > { %v429_v17 = vsub.f32 %v873_v16, %v870_v13 }
  0x69   : > { %v663_v30 = vpop.eup %662 }
  0x6a   : > { %v356_v5 = vsub.f32 %v663_v30, %v855_v37 }
  0x6c   : > { %v357_v7 = vmul.f32 %v356_v5, %v356_v5 }
  0x6e   : > { %v359_v11 = vrot.slane %v357_v7, 1 }
  0x70   : > { %v361_v21 = vadd.f32 %v359_v11, %v357_v7 }
  0xa2   : > { %v279_v24 = vpop.permute.xlu0 %278 }
  0xa3   : > { %v281_v28 = vmul.f32 %v661_v25, %v279_v24 }
  0xa5   : > { %v288_v29 = vmul.f32 0.5, %v281_v28 }
  0xa7   : > { %v290_v32 = vrot.slane %v288_v29, 2  ;;  %v274_v33 = vpop.permute.xlu0 %273 }
  0xa8   : > { %v276_v34 = vmul.f32 %v661_v25, %v274_v33 }
  0xa9   : > { %v292_v35 = vsub.f32 %v663_v30, %v290_v32  ;;  %v293_v36 = vadd.f32 %v663_v30, %v290_v32 }
  0xaa   : > { %v282_v38 = vmul.f32 0.5, %v276_v34 }
  0xab   : > { %v304_v40 = vmin.f32 %v293_v36, %v299_v27  ;;  %v305_v41 = vmax.f32 %v292_v35, %v298_v26  ;;  %v313_v42 = vsub.f32 %v293_v36, %v292_v35 }
  0xac   : > { %v284_v43 = vrot.slane %v282_v38, 2  ;;  %v436_v38 = vld [vmem:[#allocation2] sm:$0x1] }
  0xad   : > { %v306_v44 = vsub.f32 %v304_v40, %v305_v41  ;;  %v315_v45 = vrot.slane %v313_v42, 1 }
  0xae   : > { %v286_v46 = vsub.f32 %v663_v30, %v284_v43  ;;  %v287_v47 = vadd.f32 %v663_v30, %v284_v43 }
  0xaf   : > { %v307_v49 = vmax.f32 %v306_v44, 0.0 }
  0xb0   : > { %v300_v50 = vmin.f32 %v287_v47, %v299_v27  ;;  %v301_v51 = vmax.f32 %v286_v46, %v298_v26  ;;  %v312_v52 = vsub.f32 %v287_v47, %v286_v46  ;;  %v342_v53 = vpop.permute.xlu1 %341 }
  0xb1   : > { %v344_v54 = vmul.f32 %v342_v53, %v855_v37  ;;  %v309_v55 = vrot.slane %v307_v49, 1 }
  0xb2   : > { %v302_v56 = vsub.f32 %v300_v50, %v301_v51  ;;  %v317_v57 = vmul.f32 %v315_v45, %v312_v52 }
  0xb3   : > { %v345_v59 = vadd.f32 1e-16, %v344_v54 }
  0xb4   : > { %v303_v60 = vmax.f32 %v302_v56, 0.0  ;;  %v318_v61 = vand.u32 2147483647, %v317_v57 }
  0xb5   : > { %664 = vlog2.f32 %v345_v59  ;;  %v350_v62 = vpop.permute.xlu1 %349 }
  0xb6   : > { %v311_v63 = vmul.f32 %v309_v55, %v303_v60  ;;  %v325_v0 = vadd.f32 %v324_v58, %v318_v61  ;;  %v352_v1 = vmul.f32 %v350_v62, %v855_v37 }
  0xb8   : > { %v326_v2 = vsub.f32 %v325_v0, %v311_v63  ;;  %v353_v3 = vadd.f32 1e-16, %v352_v1 }
  0xba   : > { %v327_v4 = vadd.f32 1e-06, %v326_v2  ;;  %666 = vlog2.f32 %v353_v3 }
  0xbc   : > { %668 = vrcp.f32 %v327_v4 }
  0xc2   : > { %v665_v6 = vpop.eup %664 }
  0xc3   : > { %v347_v9 = vmul.f32 0.6931472, %v665_v6 }
  0xc5   : > { %v362_v10 = vsub.f32 %v842_v8, %v347_v9 }
  0xc7   : > { %v667_v12 = vpop.eup %666  ;;  %v363_v14 = vmul.f32 %v362_v10, %v362_v10 }
  0xc8   : > { %v355_v18 = vmul.f32 0.6931472, %v667_v12 }
  0xc9   : > { %v669_v19 = vpop.eup %668  ;;  %v365_v22 = vrot.slane %v363_v14, 2 }
  0xca   : > { %v329_v20 = vmul.f32 %v669_v19, %v311_v63  ;;  %v368_v23 = vsub.f32 %v842_v8, %v355_v18 }
  0xcb   : > { %v367_v27 = vadd.f32 %v365_v22, %v361_v21 }
  0xcc   : > { %v333_v25 = vmul.f32 %v331_v15, %v329_v20  ;;  %v369_v24 = vmul.f32 %v368_v23, %v368_v23 }
  0xce   : > { %v335_v26 = vrot.slane %v333_v25, 1  ;;  %v371_v28 = vrot.slane %v369_v24, 3 }
  0xd0   : > { %v337_v29 = vsub.f32 %v663_v30, %v335_v26  ;;  %v373_v31 = vadd.f32 %v371_v28, %v367_v27 }
  0xd2   : > { %v430_v32 = vmul.f32 2.5, %v373_v31  ;;  %v338_v33 = vmul.f32 %v337_v29, %v337_v29 }
  0xd4   : > { %v432_v34 = vrot.slane %v430_v32, 1 }
  0xd6   : > { %v434_v35 = vadd.f32 %v432_v34, %v338_v33 }
  0xd8   : > { %v435_v36 = vadd.f32 %v434_v35, %v429_v17 }
  0xda   : > { %v437_v8 = vsel %vm250_vm8, %v435_v36, 0.0 }
  0xdb   : > { %v438_v39 = vadd.f32 %v437_v8, %v436_v38 }
  0xdd   : > { %439 = vst [vmem:[#allocation2] sm:$0x1] %v438_v39 }
  0xe4   : > { %v457_v40 = vld [vmem:[#allocation2] sm:$0xf] }
  0xe5   : > { %v458_v30 = vsel %vm398_vm5, %v457_v40, 0.0 }
  0xe6   : > { %459 = vadd.xlane.f32.xlu1 %v458_v30 }
 0x16f   : > { %v460_v37 = vpop.xlane.xlu1 %459 }
 0x170   : > { %461 = vst [vmem:[%s204_s18] sm:$0xf] %v460_v37 }
 0x171   : > { %683 = shalt.err (!%p680_p5)
}
 0x172   : > { %s684_s5 = scalar_lea.hbm %s474_s27, 64  ;;  %s688_s8 = scalar_lea.hbm %s942_s3, 192 }
 0x173   : > { %p685_p6 = scmp.ne.s32.totalorder %s474_s27, %s684_s5  ;;  %p689_p10 = scmp.lt.s32.totalorder %s474_s27, %s942_s3 }
 0x174   : > { %p690_p11 = scmp.lt.s32.totalorder %s688_s8, %s684_s5 }
 0x175   : > { %p686_p7 = pnand %p685_p6, %p812_p4 }
 0x176   : > { %p691_p12 = por %p690_p11, %p689_p10 }
 0x177   : > { %p687_p9 = pneg %p686_p7 }
 0x179   : > { %p692_p13 = pnand %p691_p12, %p687_p9 }
 0x17b   : > { %695 = shalt.err (!%p692_p13)
}
 0x17c   : > { %583 = dma.vmem_to_hbm [thread:$0]  (%p812_p4), %s896_s19, 64, %s474_s27, %s463_s28  }
 0x17d PF: > { %p589_p0 = scmp.ge.s32.totalorder %s746_s17, 2  ;;  %s488_s11 = sand.u32 1, %s726_s12  }
 0x17e   : > { %s489_s18 = scalar_lea.sflag [#allocation4], %s488_s11 }
 0x17f   : > { %p586_p1 = pnand %p589_p0, %p819_p8 }
 0x181   : > { %p587_p2 = pneg %p586_p1 }
 0x183   : > { %721 = dma.done.wait (%p587_p2), %s489_s18, 64  }
 0x184   : > { %723 = vsyncadd (%p587_p2), %s489_s18, 4294967232  ;;  %s16_s17 = sadd.s32 1, %s746_s17   ;;  %s945_s12 = smov %s730_s13 }
 0x185   : > { %p13_p3 = scmp.ge.s32.totalorder %s16_s17, 5   ;;  %s946_s13 = smov %s734_s14 }
 0x186   : > { %s947_s14 = smov %s825_s25  ;;  %s948_s15 = smov %s742_s16 }
 0x187   : > { %s949_s16 = smov %s951_s20  ;;  %15 = sbr.rel (!%p13_p3) target bundleno = 4 (0x4), region = 78 }
 0x18c   :  { %494 = vsyncpa [#allocation4], 1 }
 0x18d   :  { %496 = vsyncpa [#allocation4 + $0x1], 1 }

</bundles_post_ra>
